<compile_context>
chip_gen: v6e
topology: v6e:2x2x1
jax: 0.10.0
libtpu: 0.0.40
codegen_flags: <defaults>
</compile_context>

<pallas_src>
import functools

import jax
import jax.numpy as jnp
from jax.experimental import pallas as pl
from jax.experimental.pallas import tpu as pltpu


def _round_up(a, b):
    return ((a + b - 1) // b) * b


def _vmem_capacity_bytes():
    try:
        return int(pltpu.get_tpu_info().vmem_capacity_bytes)
    except Exception:
        return 64 * 2**20          # conservative fallback (v7x per-core VMEM)


def _is_multicore_chip():
    try:
        kind = jax.devices()[0].device_kind.lower()
    except Exception:
        return False
    return ("v7" in kind) or ("7x" in kind)


def _septemp_kernel(x_ref, wf_ref, bf_ref, *rest, k, dilation, pad,
                    use_res_conv, mxu_dtype, c_in_pad):
    # x_ref : (B_blk, C_in, Lt)    current time tile (io dtype)
    # wf_ref: (C_out, k*C_in_p)    fused depthwise*pointwise weight (mxu dtype)
    # bf_ref: (C_out, 1)           fused bias (f32)
    # rw_ref: (C_out, C_in)        residual 1x1 weight (mxu dtype)  [optional]
    # rb_ref: (C_out, 1)           residual bias (f32)              [optional]
    # out_ref:(B_blk, C_out, Lt)
    # carry_ref:(B_blk, C_in, Cw)  last Cw columns of the previous time tile
    # stack_ref:(k*C_in_p, B_blk*Lt)  stacked shifted taps, MXU RHS operand
    if use_res_conv:
        rw_ref, rb_ref, out_ref, carry_ref, stack_ref = rest
    else:
        out_ref, carry_ref, stack_ref = rest

    B_blk, C_in, Lt = x_ref.shape
    C_in_p = c_in_pad
    Cw = carry_ref.shape[2]
    l = pl.program_id(1)

    # Start of every sequence (per batch block): zero the causal halo and the
    # sublane-padding rows of the tap stack (their w_fused columns are zero,
    # but uninitialized VMEM could hold NaN).
    if pad > 0 or C_in_p != C_in:
        @pl.when(l == 0)
        def _init():
            if pad > 0:
                carry_ref[...] = jnp.zeros_like(carry_ref)
            if C_in_p != C_in:
                for j in range(k):
                    stack_ref[j * C_in_p + C_in:(j + 1) * C_in_p, :] = (
                        jnp.zeros((C_in_p - C_in, stack_ref.shape[1]),
                                  stack_ref.dtype))

    def shifted_tap(b, d):
        # x[b] shifted right by d time steps; the first d columns come from the
        # narrow carry (last Cw columns of the previous tile), never re-read
        # from HBM.  All branches are static Python.
        if d <= 0:
            return x_ref[b]
        if d >= Lt:
            if d == Lt and Cw == Lt:
                return carry_ref[b]          # exactly the previous tile
            # Only reachable in the single-tile case with pad > L: the whole
            # window lies in the causal zero padding.
            return jnp.zeros((C_in, Lt), x_ref.dtype)
        return jnp.concatenate(
            [carry_ref[b, :, Cw - d:], x_ref[b, :, :Lt - d]], axis=-1)

    # Build the (k*C_in_p, B_blk*Lt) stack of time-shifted rows so depthwise +
    # pointwise collapse into ONE MXU matmul with contraction dim k*C_in_p and
    # a wide (B_blk*Lt) lane dimension.
    for b in range(B_blk):                       # static unroll
        for j in range(k):                       # static unroll over taps
            d = pad - j * dilation               # right shift of tap j (>= 0)
            stack_ref[j * C_in_p:j * C_in_p + C_in,
                      b * Lt:(b + 1) * Lt] = shifted_tap(b, d).astype(mxu_dtype)

    # Fused depthwise+pointwise conv (+ fused bias) on the MXU, then ReLU.
    y = jnp.dot(wf_ref[...], stack_ref[...],
                preferred_element_type=jnp.float32) + bf_ref[...]
    y = jnp.maximum(y, 0.0)
    # TODO(synk): training-mode dropout (pltpu.prng_random_bits mask) not
    # emitted; eval-mode dropout is the identity.

    if use_res_conv:
        # Unshifted operand is the j == k-1 tap already sitting in VMEM scratch
        # (no live (C_in, Lt) value carried across the big matmul).
        x0 = stack_ref[(k - 1) * C_in_p:(k - 1) * C_in_p + C_in, :]
        r = jnp.dot(rw_ref[...], x0,
                    preferred_element_type=jnp.float32) + rb_ref[...]
        z = jnp.maximum(y + r, 0.0)
        for b in range(B_blk):
            out_ref[b] = z[:, b * Lt:(b + 1) * Lt].astype(out_ref.dtype)
    else:
        for b in range(B_blk):
            r = x_ref[b].astype(jnp.float32)
            out_ref[b] = jnp.maximum(y[:, b * Lt:(b + 1) * Lt] + r,
                                     0.0).astype(out_ref.dtype)

    # Carry only the last Cw columns, and only if a next L-step will read them.
    if pad > 0:
        @pl.when(l + 1 < pl.num_programs(1))
        def _carry():
            for b in range(B_blk):
                carry_ref[b] = x_ref[b, :, Lt - Cw:]


def separable_temporal_block(x, params, *, k, dilation, lt_target=None,
                             b_blk=None, mxu_dtype=jnp.bfloat16,
                             io_dtype=None, core_parallel=None):
    """x: (N, C_in, L) -> (N, C_out, L) (eval-mode forward)."""
    N, C_in, L = x.shape
    C_out = params["point_w"].shape[0]
    pad = (k - 1) * dilation
    use_res_conv = (C_in != C_out)

    if io_dtype is not None:                 # bf16 I/O in the HBM-bound regime
        x = x.astype(io_dtype)
    io_bytes = jnp.dtype(x.dtype).itemsize
    mxu_bytes = jnp.dtype(mxu_dtype).itemsize

    # Per-tap row stride padded to the sublane-packing granule of mxu_dtype.
    sub = 32 // mxu_bytes                    # 8 f32 / 16 bf16 / 32 int8-fp8
    C_in_p = _round_up(C_in, sub)

    # --- wrapper-side weight prep: fold the depthwise taps into the 1x1 ---
    # W_fused[o, j*C_in_p + c] = point_w[o, c] * depth_w[c, j]  (pad rows = 0)
    wf3 = params["point_w"][:, None, :] * params["depth_w"].T[None, :, :]
    wf3 = jnp.pad(wf3, ((0, 0), (0, 0), (0, C_in_p - C_in)))
    w_fused = wf3.reshape(C_out, k * C_in_p).astype(mxu_dtype)
    b_fused = (jnp.sum(params["point_w"] * params["depth_b"][:, 0][None, :],
                       axis=1, keepdims=True)
               + params["point_b"]).astype(jnp.float32)

    # --- generation-aware tile sizing -------------------------------------
    cap = _vmem_capacity_bytes()
    budget = int(0.70 * cap)

    w_bytes = C_out * k * C_in_p * mxu_bytes + C_out * 4
    if use_res_conv:
        w_bytes += C_out * C_in * mxu_bytes + C_out * 4

    def est(lt_blk, nb):
        cw = min(_round_up(max(pad, 1), 128), lt_blk)
        return (2 * nb * C_in * lt_blk * io_bytes      # input tile, 2x-buffered
                + 2 * nb * C_out * lt_blk * io_bytes   # output tile, 2x-buffered
                + nb * C_in * cw * io_bytes            # carry scratch
                + k * C_in_p * nb * lt_blk * mxu_bytes  # tap-stack scratch
                + 2 * w_bytes)                         # resident weights

    lt_min = _round_up(max(pad, 1), 128)
    if lt_target is not None:
        lt = _round_up(max(int(lt_target), pad, 1), 128)
    else:
        lt = lt_min
        for cand in range(max(2048, lt_min), lt_min - 1, -128):
            if est(cand, 1) <= budget:
                lt = cand
                break

    if L <= lt:
        Lt, n_l = L, 1                       # single tile: block == full dim
    else:
        Lt, n_l = lt, pl.cdiv(L, lt)
    L_pad = Lt * n_l

    # Batch packing (wide MXU RHS) — auto only for lane-aligned tiles.
    if b_blk is None:
        b_blk = 1
        if Lt % 128 == 0:
            while b_blk < min(N, 8) and est(Lt, b_blk + 1) <= budget:
                b_blk += 1
    b_blk = max(1, min(int(b_blk), N))
    n_b = pl.cdiv(N, b_blk)
    N_pad = n_b * b_blk

    xr = x
    if (L_pad != L) or (N_pad != N):
        xr = jnp.pad(x, ((0, N_pad - N), (0, 0), (0, L_pad - L)))

    Cw = min(_round_up(max(pad, 1), 128), Lt)
    vmem_limit = int(min(0.75 * cap, max(32 * 2**20, 2 * est(Lt, b_blk))))

    kernel = functools.partial(_septemp_kernel, k=k, dilation=dilation, pad=pad,
                               use_res_conv=use_res_conv, mxu_dtype=mxu_dtype,
                               c_in_pad=C_in_p)

    def const_spec(shape):
        # Constant block index: weights stay resident in VMEM (no re-DMA).
        # TODO(synk): pipeline_mode=pl.Buffered(1) would drop the second
        # buffer of these constants on v7x.
        return pl.BlockSpec(shape, lambda n, l: (0,) * len(shape))

    in_specs = [
        pl.BlockSpec((b_blk, C_in, Lt), lambda n, l: (n, 0, l)),
        const_spec(w_fused.shape),
        const_spec(b_fused.shape),
    ]
    args = [xr, w_fused, b_fused]
    if use_res_conv:
        rw = params["res_w"].astype(mxu_dtype)
        rb = params["res_b"].astype(jnp.float32)
        in_specs += [const_spec(rw.shape), const_spec(rb.shape)]
        args += [rw, rb]

    # Batch-block axis: core-parallel on multi-TC chips (v7x), else parallel.
    if core_parallel is None:
        core_parallel = _is_multicore_chip() and n_b >= 2
    batch_sem = pltpu.CORE_PARALLEL if core_parallel else pltpu.PARALLEL

    out = pl.pallas_call(
        kernel,
        out_shape=jax.ShapeDtypeStruct((N_pad, C_out, L_pad), x.dtype),
        grid=(n_b, n_l),
        in_specs=in_specs,
        out_specs=pl.BlockSpec((b_blk, C_out, Lt), lambda n, l: (n, 0, l)),
        scratch_shapes=[
            pltpu.VMEM((b_blk, C_in, Cw), x.dtype),        # narrow causal halo
            pltpu.VMEM((k * C_in_p, b_blk * Lt), mxu_dtype),  # tap stack
        ],
        # L axis MUST stay "arbitrary" (sequential) — the halo carry depends
        # on in-order execution of the time tiles of each batch block.
        compiler_params=pltpu.CompilerParams(
            dimension_semantics=(batch_sem, pltpu.ARBITRARY),
            vmem_limit_bytes=vmem_limit),
    )(*args)

    if (L_pad != L) or (N_pad != N):
        out = out[:N, :, :L]
    return out


def _reference(x, params, *, k, dilation):
    """Pure-JAX f32 reference mirroring the PyTorch forward in eval mode."""
    N, C_in, L = x.shape
    pad = (k - 1) * dilation
    hp = jax.lax.Precision.HIGHEST
    C_out = params["point_w"].shape[0]
    xp = jnp.pad(x, ((0, 0), (0, 0), (pad, 0)))
    dw = jnp.zeros((N, C_in, L), x.dtype) + params["depth_b"][None]
    for j in range(k):
        dw = dw + params["depth_w"][None, :, j:j + 1] * \
             xp[:, :, j * dilation:j * dilation + L]
    y = jnp.einsum("oc,ncl->nol", params["point_w"], dw,
                   precision=hp) + params["point_b"][None]
    y = jnp.maximum(y, 0.0)
    if C_in != C_out:
        r = jnp.einsum("oc,ncl->nol", params["res_w"], x,
                       precision=hp) + params["res_b"][None]
    else:
        r = x
    return jnp.maximum(y + r, 0.0)


def _init_params(key, c_in, c_out, k):
    """PyTorch-style uniform(-1/sqrt(fan_in), 1/sqrt(fan_in)) init."""
    ks = jax.random.split(key, 6)

    def u(kk, shape, fan):
        b = 1.0 / (fan ** 0.5)
        return jax.random.uniform(kk, shape, jnp.float32, -b, b)

    p = {
        "depth_w": u(ks[0], (c_in, k), float(k)),     # groups=c_in -> fan_in=k
        "depth_b": u(ks[1], (c_in, 1), float(k)),
        "point_w": u(ks[2], (c_out, c_in), float(c_in)),
        "point_b": u(ks[3], (c_out, 1), float(c_in)),
    }
    if c_in != c_out:                                  # residual 1x1 only then
        p["res_w"] = u(ks[4], (c_out, c_in), float(c_in))
        p["res_b"] = u(ks[5], (c_out, 1), float(c_in))
    return p


def _check(name, *, N, C_in, C_out, L, k, dil, lt_target, b_blk=None,
           mxu_dtypes=(jnp.float32, jnp.bfloat16), bf16_io=False):
    key = jax.random.PRNGKey(0)
    kx, kp = jax.random.split(key)
    x = jax.random.normal(kx, (N, C_in, L), jnp.float32)
    params = _init_params(kp, C_in, C_out, k)
    ref = _reference(x, params, k=k, dilation=dil)

    for md in mxu_dtypes:
        tight = jnp.dtype(md) == jnp.dtype(jnp.float32)
        tol = 1e-4 if tight else 5e-2
        out = separable_temporal_block(x, params, k=k, dilation=dil,
                                       lt_target=lt_target, b_blk=b_blk,
                                       mxu_dtype=md)
        out = jax.block_until_ready(out)
        assert out.shape == ref.shape, name
        assert jnp.allclose(out, ref, atol=tol, rtol=tol), name

    if bf16_io:                              # bf16 at the kernel boundary
        out = separable_temporal_block(x, params, k=k, dilation=dil,
                                       lt_target=lt_target, b_blk=b_blk,
                                       mxu_dtype=jnp.bfloat16,
                                       io_dtype=jnp.bfloat16)
        out = jax.block_until_ready(out)
        assert out.shape == ref.shape, name
        assert jnp.allclose(out.astype(jnp.float32), ref,
                            atol=5e-2, rtol=5e-2), name


if __name__ == "__main__":
    # Residual 1x1 conv, single tile, auto (generation-aware) Lt selection.
    _check("small_resconv", N=2, C_in=4, C_out=8, L=16, k=3, dil=2,
           lt_target=None)
    # Identity residual (c_in == c_out).
    _check("identity_res", N=2, C_in=8, C_out=8, L=16, k=3, dil=2,
           lt_target=512)
    # pad > L: exercises the all-zero causal-window branch.
    _check("causal_zero", N=2, C_in=4, C_out=8, L=16, k=3, dil=12,
           lt_target=512, mxu_dtypes=(jnp.float32,))
    # Multi-tile time axis with carried (narrow) causal halo + ragged tail.
    _check("tiled_L", N=1, C_in=8, C_out=16, L=300, k=3, dil=8,
           lt_target=128)
    # Batch-packed wide MXU RHS (b_blk=2), padded batch (N=3 -> 4), bf16 I/O.
    _check("tiled_batched", N=3, C_in=8, C_out=16, L=300, k=3, dil=8,
           lt_target=128, b_blk=2, bf16_io=True)

    print("KERNEL_OK")
</pallas_src>

<mosaic_0001>
module attributes {stable_mosaic.version = 11 : i64} {
  func.func @_septemp_kernel(%arg0: i32, %arg1: i32, %arg2: memref<1x4x16xf32, #tpu.memory_space<vmem>>, %arg3: memref<8x24xf32, #tpu.memory_space<vmem>>, %arg4: memref<8x1xf32, #tpu.memory_space<vmem>>, %arg5: memref<8x4xf32, #tpu.memory_space<vmem>>, %arg6: memref<8x1xf32, #tpu.memory_space<vmem>>, %arg7: memref<1x8x16xf32, #tpu.memory_space<vmem>>, %arg8: memref<1x4x16xf32, #tpu.memory_space<vmem>>, %arg9: memref<24x16xf32, #tpu.memory_space<vmem>>) attributes {dimension_semantics = [#tpu.dimension_semantics<parallel>, #tpu.dimension_semantics<arbitrary>], iteration_bounds = array<i64: 2, 1>, scalar_prefetch = 0 : i64, scratch_operands = 2 : i64, tpu.core_type = #tpu.core_type<tc>, window_params = [{transform_indices = @transform_0, window_bounds = array<i64: 1, 4, 16>}, {pipeline_mode = #tpu.pipeline_mode<synchronous>, transform_indices = @transform_1, window_bounds = array<i64: 8, 24>}, {pipeline_mode = #tpu.pipeline_mode<synchronous>, transform_indices = @transform_2, window_bounds = array<i64: 8, 1>}, {pipeline_mode = #tpu.pipeline_mode<synchronous>, transform_indices = @transform_3, window_bounds = array<i64: 8, 4>}, {pipeline_mode = #tpu.pipeline_mode<synchronous>, transform_indices = @transform_4, window_bounds = array<i64: 8, 1>}, {transform_indices = @transform_5, window_bounds = array<i64: 1, 8, 16>}]} {
    %c0_i32 = arith.constant 0 : i32
    %0 = arith.cmpi eq, %arg1, %c0_i32 : i32
    %1 = arith.extui %0 : i1 to i32
    %c0_i32_0 = arith.constant 0 : i32
    %2 = arith.cmpi ne, %1, %c0_i32_0 : i32
    scf.if %2 {
      %cst_37 = arith.constant 0.000000e+00 : f32
      %42 = vector.broadcast %cst_37 : f32 to vector<1x4x16xf32>
      %c0_38 = arith.constant 0 : index
      %c0_39 = arith.constant 0 : index
      %c0_40 = arith.constant 0 : index
      %43 = vector.load %arg8[%c0_38, %c0_39, %c0_40] : memref<1x4x16xf32, #tpu.memory_space<vmem>>, vector<1x4x16xf32>
      tpu.vector_store %arg8[%c0_38, %c0_39, %c0_40], %42 {strides = array<i32>} : memref<1x4x16xf32, #tpu.memory_space<vmem>>, vector<1x4x16xf32>,
      %cst_41 = arith.constant 0.000000e+00 : f32
      %44 = vector.broadcast %cst_41 : f32 to vector<4x16xf32>
      %c4 = arith.constant 4 : index
      %c0_42 = arith.constant 0 : index
      %45 = vector.load %arg9[%c4, %c0_42] : memref<24x16xf32, #tpu.memory_space<vmem>>, vector<4x16xf32>
      tpu.vector_store %arg9[%c4, %c0_42], %44 {strides = array<i32>} : memref<24x16xf32, #tpu.memory_space<vmem>>, vector<4x16xf32>,
      %cst_43 = arith.constant 0.000000e+00 : f32
      %46 = vector.broadcast %cst_43 : f32 to vector<4x16xf32>
      %c12_44 = arith.constant 12 : index
      %c0_45 = arith.constant 0 : index
      %47 = vector.load %arg9[%c12_44, %c0_45] : memref<24x16xf32, #tpu.memory_space<vmem>>, vector<4x16xf32>
      tpu.vector_store %arg9[%c12_44, %c0_45], %46 {strides = array<i32>} : memref<24x16xf32, #tpu.memory_space<vmem>>, vector<4x16xf32>,
      %cst_46 = arith.constant 0.000000e+00 : f32
      %48 = vector.broadcast %cst_46 : f32 to vector<4x16xf32>
      %c20 = arith.constant 20 : index
      %c0_47 = arith.constant 0 : index
      %49 = vector.load %arg9[%c20, %c0_47] : memref<24x16xf32, #tpu.memory_space<vmem>>, vector<4x16xf32>
      tpu.vector_store %arg9[%c20, %c0_47], %48 {strides = array<i32>} : memref<24x16xf32, #tpu.memory_space<vmem>>, vector<4x16xf32>,
    } else {
    }
    %c0 = arith.constant 0 : index
    %c0_1 = arith.constant 0 : index
    %c12 = arith.constant 12 : index
    %3 = vector.load %arg8[%c0, %c0_1, %c12] : memref<1x4x16xf32, #tpu.memory_space<vmem>>, vector<1x4x4xf32>
    %4 = vector.shape_cast %3 : vector<1x4x4xf32> to vector<4x4xf32>
    %c0_2 = arith.constant 0 : index
    %c0_3 = arith.constant 0 : index
    %c0_4 = arith.constant 0 : index
    %5 = vector.load %arg2[%c0_2, %c0_3, %c0_4] : memref<1x4x16xf32, #tpu.memory_space<vmem>>, vector<1x4x12xf32>
    %6 = vector.shape_cast %5 : vector<1x4x12xf32> to vector<4x12xf32>
    %7 = tpu.concatenate %4, %6 in 1 : vector<4x4xf32>, vector<4x12xf32> -> vector<4x16xf32>
    %c0_5 = arith.constant 0 : index
    %c0_6 = arith.constant 0 : index
    %8 = vector.load %arg9[%c0_5, %c0_6] : memref<24x16xf32, #tpu.memory_space<vmem>>, vector<4x16xf32>
    tpu.vector_store %arg9[%c0_5, %c0_6], %7 {strides = array<i32>} : memref<24x16xf32, #tpu.memory_space<vmem>>, vector<4x16xf32>,
    %c0_7 = arith.constant 0 : index
    %c0_8 = arith.constant 0 : index
    %c14 = arith.constant 14 : index
    %9 = vector.load %arg8[%c0_7, %c0_8, %c14] : memref<1x4x16xf32, #tpu.memory_space<vmem>>, vector<1x4x2xf32>
    %10 = vector.shape_cast %9 : vector<1x4x2xf32> to vector<4x2xf32>
    %c0_9 = arith.constant 0 : index
    %c0_10 = arith.constant 0 : index
    %c0_11 = arith.constant 0 : index
    %11 = vector.load %arg2[%c0_9, %c0_10, %c0_11] : memref<1x4x16xf32, #tpu.memory_space<vmem>>, vector<1x4x14xf32>
    %12 = vector.shape_cast %11 : vector<1x4x14xf32> to vector<4x14xf32>
    %13 = tpu.concatenate %10, %12 in 1 : vector<4x2xf32>, vector<4x14xf32> -> vector<4x16xf32>
    %c8 = arith.constant 8 : index
    %c0_12 = arith.constant 0 : index
    %14 = vector.load %arg9[%c8, %c0_12] : memref<24x16xf32, #tpu.memory_space<vmem>>, vector<4x16xf32>
    tpu.vector_store %arg9[%c8, %c0_12], %13 {strides = array<i32>} : memref<24x16xf32, #tpu.memory_space<vmem>>, vector<4x16xf32>,
    %c0_13 = arith.constant 0 : index
    %c0_14 = arith.constant 0 : index
    %c0_15 = arith.constant 0 : index
    %15 = vector.load %arg2[%c0_13, %c0_14, %c0_15] : memref<1x4x16xf32, #tpu.memory_space<vmem>>, vector<1x4x16xf32>
    %16 = vector.shape_cast %15 : vector<1x4x16xf32> to vector<4x16xf32>
    %c16 = arith.constant 16 : index
    %c0_16 = arith.constant 0 : index
    %17 = vector.load %arg9[%c16, %c0_16] : memref<24x16xf32, #tpu.memory_space<vmem>>, vector<4x16xf32>
    tpu.vector_store %arg9[%c16, %c0_16], %16 {strides = array<i32>} : memref<24x16xf32, #tpu.memory_space<vmem>>, vector<4x16xf32>,
    %c0_17 = arith.constant 0 : index
    %c0_18 = arith.constant 0 : index
    %18 = vector.load %arg3[%c0_17, %c0_18] : memref<8x24xf32, #tpu.memory_space<vmem>>, vector<8x24xf32>
    %c0_19 = arith.constant 0 : index
    %c0_20 = arith.constant 0 : index
    %19 = vector.load %arg9[%c0_19, %c0_20] : memref<24x16xf32, #tpu.memory_space<vmem>>, vector<24x16xf32>
    %cst = arith.constant dense<0.000000e+00> : vector<8x16xf32>
    %20 = tpu.matmul %18, %19, %cst {dimension_numbers = #tpu.dot_dimension_numbers<[1], [0], [0], [1], [0, 0, 1, 1], [], []>} : vector<8x24xf32>, vector<24x16xf32>, vector<8x16xf32> -> vector<8x16xf32>
    %c0_21 = arith.constant 0 : index
    %c0_22 = arith.constant 0 : index
    %21 = vector.load %arg4[%c0_21, %c0_22] : memref<8x1xf32, #tpu.memory_space<vmem>>, vector<8x1xf32>
    %22 = vector.broadcast %21 : vector<8x1xf32> to vector<8x16xf32>
    %23 = arith.addf %20, %22 : vector<8x16xf32>
    %cst_23 = arith.constant 0.000000e+00 : f32
    %24 = vector.broadcast %cst_23 : f32 to vector<8x16xf32>
    %25 = arith.maximumf %23, %24 : vector<8x16xf32>
    %c16_24 = arith.constant 16 : index
    %c0_25 = arith.constant 0 : index
    %26 = vector.load %arg9[%c16_24, %c0_25] : memref<24x16xf32, #tpu.memory_space<vmem>>, vector<4x16xf32>
    %c0_26 = arith.constant 0 : index
    %c0_27 = arith.constant 0 : index
    %27 = vector.load %arg5[%c0_26, %c0_27] : memref<8x4xf32, #tpu.memory_space<vmem>>, vector<8x4xf32>
    %cst_28 = arith.constant dense<0.000000e+00> : vector<8x16xf32>
    %28 = tpu.matmul %27, %26, %cst_28 {dimension_numbers = #tpu.dot_dimension_numbers<[1], [0], [0], [1], [0, 0, 1, 1], [], []>} : vector<8x4xf32>, vector<4x16xf32>, vector<8x16xf32> -> vector<8x16xf32>
    %c0_29 = arith.constant 0 : index
    %c0_30 = arith.constant 0 : index
    %29 = vector.load %arg6[%c0_29, %c0_30] : memref<8x1xf32, #tpu.memory_space<vmem>>, vector<8x1xf32>
    %30 = vector.broadcast %29 : vector<8x1xf32> to vector<8x16xf32>
    %31 = arith.addf %28, %30 : vector<8x16xf32>
    %32 = arith.addf %25, %31 : vector<8x16xf32>
    %cst_31 = arith.constant 0.000000e+00 : f32
    %33 = vector.broadcast %cst_31 : f32 to vector<8x16xf32>
    %34 = arith.maximumf %32, %33 : vector<8x16xf32>
    %c0_32 = arith.constant 0 : index
    %c0_33 = arith.constant 0 : index
    %c0_34 = arith.constant 0 : index
    %35 = vector.load %arg7[%c0_32, %c0_33, %c0_34] : memref<1x8x16xf32, #tpu.memory_space<vmem>>, vector<1x8x16xf32>
    %36 = vector.shape_cast %35 : vector<1x8x16xf32> to vector<8x16xf32>
    %37 = vector.shape_cast %34 : vector<8x16xf32> to vector<1x8x16xf32>
    tpu.vector_store %arg7[%c0_32, %c0_33, %c0_34], %37 {strides = array<i32>} : memref<1x8x16xf32, #tpu.memory_space<vmem>>, vector<1x8x16xf32>,
    %c1_i32 = arith.constant 1 : i32
    %38 = arith.addi %arg1, %c1_i32 : i32
    %c1_i32_35 = arith.constant 1 : i32
    %39 = arith.cmpi slt, %38, %c1_i32_35 : i32
    %40 = arith.extui %39 : i1 to i32
    %c0_i32_36 = arith.constant 0 : i32
    %41 = arith.cmpi ne, %40, %c0_i32_36 : i32
    scf.if %41 {
      %c0_37 = arith.constant 0 : index
      %c0_38 = arith.constant 0 : index
      %c0_39 = arith.constant 0 : index
      %42 = vector.load %arg2[%c0_37, %c0_38, %c0_39] : memref<1x4x16xf32, #tpu.memory_space<vmem>>, vector<1x4x16xf32>
      %43 = vector.shape_cast %42 : vector<1x4x16xf32> to vector<4x16xf32>
      %c0_40 = arith.constant 0 : index
      %c0_41 = arith.constant 0 : index
      %c0_42 = arith.constant 0 : index
      %44 = vector.load %arg8[%c0_40, %c0_41, %c0_42] : memref<1x4x16xf32, #tpu.memory_space<vmem>>, vector<1x4x16xf32>
      %45 = vector.shape_cast %44 : vector<1x4x16xf32> to vector<4x16xf32>
      %46 = vector.shape_cast %43 : vector<4x16xf32> to vector<1x4x16xf32>
      tpu.vector_store %arg8[%c0_40, %c0_41, %c0_42], %46 {strides = array<i32>} : memref<1x4x16xf32, #tpu.memory_space<vmem>>, vector<1x4x16xf32>,
    } else {
    }
    return
  }
  func.func @transform_0(%arg0: i32, %arg1: i32) -> (i32, i32, i32) {
    %c0_i32 = arith.constant 0 : i32
    %c0_i32_0 = arith.constant 0 : i32
    return %arg0, %c0_i32, %arg1 : i32, i32, i32
  }
  func.func @transform_1(%arg0: i32, %arg1: i32) -> (i32, i32) {
    %c0_i32 = arith.constant 0 : i32
    %c0_i32_0 = arith.constant 0 : i32
    %c0_i32_1 = arith.constant 0 : i32
    return %c0_i32, %c0_i32_0 : i32, i32
  }
  func.func @transform_2(%arg0: i32, %arg1: i32) -> (i32, i32) {
    %c0_i32 = arith.constant 0 : i32
    %c0_i32_0 = arith.constant 0 : i32
    %c0_i32_1 = arith.constant 0 : i32
    return %c0_i32, %c0_i32_0 : i32, i32
  }
  func.func @transform_3(%arg0: i32, %arg1: i32) -> (i32, i32) {
    %c0_i32 = arith.constant 0 : i32
    %c0_i32_0 = arith.constant 0 : i32
    %c0_i32_1 = arith.constant 0 : i32
    return %c0_i32, %c0_i32_0 : i32, i32
  }
  func.func @transform_4(%arg0: i32, %arg1: i32) -> (i32, i32) {
    %c0_i32 = arith.constant 0 : i32
    %c0_i32_0 = arith.constant 0 : i32
    %c0_i32_1 = arith.constant 0 : i32
    return %c0_i32, %c0_i32_0 : i32, i32
  }
  func.func @transform_5(%arg0: i32, %arg1: i32) -> (i32, i32, i32) {
    %c0_i32 = arith.constant 0 : i32
    %c0_i32_0 = arith.constant 0 : i32
    return %arg0, %c0_i32, %arg1 : i32, i32, i32
  }
}

</mosaic_0001>

<bundles_post_ra>
// kernel: tpu_custom_call.1
= control target key start
LH: loop header
LB: loop body
LE: loop exit
PB: predicated region body
PF: predicated region fallthrough
CT: control target
= control target key end

     0   :  { %10 = vsyncpa [#allocation5], 0  ;;  %s882_s0 = inlined_call_operand.vmem [shape: f32[2,4,16], index: 0, kind: input, shape index: {}]   ;;  %s883_s1 = inlined_call_operand.vmem [shape: f32[8,24], index: 1, kind: input, shape index: {}]   ;;  %s884_s2 = inlined_call_operand.vmem [shape: f32[8,1], index: 2, kind: input, shape index: {}]   ;;  %s885_s3 = inlined_call_operand.vmem [shape: f32[8,4], index: 3, kind: input, shape index: {}]   ;;  %s886_s4 = inlined_call_operand.vmem [shape: f32[8,1], index: 4, kind: input, shape index: {}]   ;;  %s887_s5 = inlined_call_operand.hbm [shape: f32[2,8,16], index: 5, kind: output, shape index: {}]  }
   0x1   :  { %12 = vsyncpa [#allocation5 + $0x1], 0  ;;  %s764_s18 = smov 0   ;;  %s766_s19 = smov 0  }
   0x2   :  { %s768_s20 = smov 0   ;;  %s770_s21 = smov 0  }
   0x3   :  { %s772_s22 = smov 0   ;;  %s774_s23 = smov 0  }
   0x4 LB: > { %s550_s24 = sadd.s32 4294967295, %s724_s23   ;;  %s551_s25 = sadd.s32 4294967294, %s724_s23   ;;  %s724_s23 = sphi %s774_s23, %s18_s23   ;;  %s720_s22 = sphi %s772_s22, %s894_s22   ;;  %s716_s21 = sphi %s770_s21, %s893_s21   ;;  %s712_s20 = sphi %s768_s20, %s892_s20   ;;  %s708_s19 = sphi %s766_s19, %s891_s19   ;;  %s704_s18 = sphi %s764_s18, %s890_s18  }
   0x5   : > { %s30_s26 = sadd.s32 1, %s720_s22  ;;  %s151_s27 = sadd.s32 1, %s712_s20 }
   0x6   : > { %p32_p0 = scmp.ge.s32.totalorder %s30_s26, 2  ;;  %p161_p1 = scmp.ne.s32.totalorder %s712_s20, %s708_s19 }
   0x7   : > { %p162_p2 = scmp.eq.s32.totalorder %s550_s24, 1  ;;  %p167_p3 = scmp.ne.s32.totalorder %s708_s19, %s704_s18 }
   0x8   : > { %s896_s26 = smov (%p32_p0, %s30_s26), 0  ;;  %p168_p5 = scmp.eq.s32.totalorder %s551_s25, 1 }
   0x9   : > { %p804_p4 = por %p162_p2, %p161_p1  ;;  %s146_s29 = ssub.s32 %s720_s22, %s896_s26 }
   0xa   : > { %p554_p6 = scmp.ge.s32.totalorder %s724_s23, 1  ;;  %p149_p7 = scmp.eq.s32.totalorder %s146_s29, 0 }
   0xb   : > { %p811_p8 = por %p168_p5, %p167_p3  ;;  %p208_p9 = scmp.lt.s32.totalorder %s724_s23, 3 }
   0xc   : > { %s817_s6 = scalar_select %p149_p7, %s712_s20, %s151_s27  }
   0xd   : > { %p209_p10 = pnand %p554_p6, %p208_p9 }
   0xe   : > { %p238_p11 = scmp.lt.s32.totalorder (!%p209_p10), %s716_s21, 1  ;;  %s727_s12 = smov (!%p209_p10), 114  }
   0xf   : > { %212 = sbr.rel (%p209_p10) target bundleno = 374 (0x176), region = 40  ;;  %s728_s13 = smov (!%p209_p10), 116  }
  0x10   : > { %s730_s14 = smov (!%p209_p10), 2   ;;  %s731_s15 = smov (!%p209_p10), 4  }
  0x11   : > { %s235_s9 = sand.u32 (!%p209_p10), 1, %s708_s19   ;;  %s733_s25 = smov (!%p209_p10), [#allocation4]  }
  0x12   : > { %s555_s10 = sshll.u32 (!%p209_p10), %s235_s9, 3  ;;  %s465_s17 = scalar_lea.sflag (!%p209_p10), [#allocation5], %s235_s9 }
  0x13   : > { %s652_s27 = sshll.u32 (!%p209_p10), %s733_s25, 4  ;;  %s653_s27 = int_to_ptr.vmem [resolvable:$false] %s652_s27 }
  0x14   : > { %vm249_vm0 = vcmask 125952   ;;  %v726_v0 = vmov 0.0   ;;  %s239_s7 = scalar_select %p238_p11, %s716_s21, 1  ;;  %vm729_vm1 = vmmov 0   ;;  %vm379_vm2 = vcmask 1043456   ;;  %v369_v6 = vld [vmem:[%s885_s3] sm:$0xff] }
  0x15   : > { %250 = vst.msk [vmem:[#allocation2] sm:$0xf] %vm249_vm0, %v726_v0  ;;  %251 = vst.msk [vmem:[#allocation3 + $0x4] sm:$0xf] %vm249_vm0, %v726_v0  ;;  %570 = vmatprep.subr.mxu0 %v726_v0  ;;  %579 = vmatprep.subr.mxu1 %v726_v0  ;;  %v732_v7 = vmov 0   ;;  %v287_v8 = vld [vmem:[%s884_s2] sm:$0xff] }
  0x16   : > { %252 = vst.msk [vmem:[#allocation3 + $0xc] sm:$0xf] %vm249_vm0, %v726_v0  ;;  %253 = vst.msk [vmem:[#allocation3 + $0x14] sm:$0xf] %vm249_vm0, %v726_v0  ;;  %s556_s8 = sshll.u32 %s239_s7, 2  ;;  %576 = vmatprep.mubr.msk.f32.mxu0 %vm729_vm1, %v726_v0  ;;  %581 = vmatprep.mubr.msk.f32.mxu1 %vm729_vm1, %v726_v0  ;;  %v370_v11 = vld [vmem:[%s886_s4] sm:$0xff] }
  0x17   : > { %s244_s11 = scalar_lea.vmem %s882_s0, %s556_s8  ;;  %646 = vset.pattern.permute.xlu0 %v732_v7  ;;  %647 = vset.pattern.permute.xlu1 %v732_v7  ;;  %vm264_vm3 = vcmask 31744   ;;  %vm278_vm4 = vcmask 15360   ;;  %v283_v19 = vld [vmem:[%s883_s1] sm:$0xff]  ;;  %vm293_vm5 = vcmask 195584   ;;  %vm455_vm6 = vcmask 130048  }
  0x18   : > { %v281_v1 = vld [vmem:[%s244_s11] sm:$0xf] }
  0x19   : > { %282 = vst.msk [vmem:[#allocation3 + $0x10] sm:$0xf] %vm249_vm0, %v281_v1  ;;  %v269_v4 = vld [vmem:[%s244_s11] sm:$0xf] }
  0x1a   : > { %v255_v5 = vld [vmem:[%s244_s11] sm:$0xf]  ;;  %s561_s11 = sshll.u32 %s716_s21, 7  ;;  %s654_s21 = scalar_lea.vmem %s653_s27, 256 }
  0x1b   : > { %s477_s16 = scalar_lea.hbm %s887_s5, %s561_s11 }
  0x1c   : > { %v268_v2 = vld [vmem:[#allocation2] sm:$0xf] }
  0x1d   : > { %v254_v3 = vld [vmem:[#allocation2] sm:$0xf]  ;;  %271 = vrot.lane.b32.xlu0 %v268_v2, %s727_s12  ;;  %s237_s12 = scalar_lea.vmem [#allocation4], %s555_s10 }
  0x1e   : > { %257 = vrot.lane.b32.xlu1 %v254_v3, %s728_s13  ;;  %s479_s13 = sshll.u32 %s237_s12, 4  ;;  %s480_s13 = int_to_ptr.vmem [resolvable:$true] %s479_s13 }
  0x1f   : > { %s648_s24 = scalar_lea.vmem %s480_s13, 128  ;;  %p655_p1 = scmp.lt.s32.totalorder %s480_s13, %s653_s27 }
  0x20   : > { %v286_v9 = vld [vmem:[#allocation3 + $0x10] sm:$0xff]  ;;  %p649_p12 = scmp.ne.s32.totalorder %s480_s13, %s648_s24  ;;  %p656_p2 = scmp.lt.s32.totalorder %s654_s21, %s648_s24 }
  0x21   : > { %275 = vrot.lane.b32.xlu0 %v269_v4, %s730_s14  ;;  %v368_v10 = vld [vmem:[#allocation3 + $0x10] sm:$0xf]  ;;  %571 = vmatpush3.msra.mxu0 %v286_v9 }
  0x22   : > { %261 = vrot.lane.b32.xlu1 %v255_v5, %s731_s15  ;;  %580 = vmatpush3.msk.msra.mxu1 %vm379_vm2, %v368_v10  ;;  %p650_p13 = pnand %p649_p12, %p804_p4  ;;  %p657_p3 = por %p656_p2, %p655_p1 }
  0x23   : > { %572 = vmatprep.subr.mxu0 %v726_v0  ;;  %582 = vmatmul.mubr.msk.f32.vlgmr.msra.gmra.mxu1 %vm264_vm3, %v369_v6 }
  0x24   : > { %p651_p0 = pneg %p650_p13 }
  0x25   : > { %290 = vperm.xlu0 %646, %v287_v8  }
  0x26   : > { %373 = vperm.xlu1 %647, %v370_v11   ;;  %p658_p5 = pnand %p657_p3, %p651_p0 }
  0x8f   : > { %v272_v12 = vpop.permute.xlu0 %271 }
  0x90   : > { %v258_v13 = vpop.permute.xlu1 %257 }
  0x93   : > { %v276_v14 = vpop.permute.xlu0 %275 }
  0x94   : > { %v262_v15 = vpop.permute.xlu1 %261  ;;  %v279_v16 = vsel %vm278_vm4, %v272_v12, %v276_v14 }
  0x95   : > { %v265_v17 = vsel %vm264_vm3, %v258_v13, %v262_v15  ;;  %280 = vst.msk [vmem:[#allocation3 + $0x8] sm:$0xf] %vm249_vm0, %v279_v16 }
  0x96   : > { %267 = vst.msk [vmem:[#allocation3] sm:$0xf] %vm249_vm0, %v265_v17 }
  0x9c   : > { %v285_v18 = vld [vmem:[#allocation3 + $0x8] sm:$0xff] }
  0x9d   : > { %573 = vmatpush3.msra.mxu0 %v285_v18  ;;  %v284_v20 = vld [vmem:[#allocation3] sm:$0xff] }
  0x9e   : > { %574 = vmatprep.subr.mxu0 %v726_v0 }
  0x9f   : > { %575 = vmatpush3.msra.mxu0 %v284_v20 }
  0xa0   : > { %577 = vmatmul.mubr.msk.f32.vlgmr.msra.gmra.mxu0 %vm293_vm5, %v283_v19  ;;  %v291_v23 = vpop.permute.xlu0 %290 }
  0xa1   : > { %v374_v24 = vpop.permute.xlu1 %373 }
  0xe3   : > { %v449_v21 = vpop.f32.mrf.mxu1 }
  0xe4   : > { %v450_v27 = vadd.f32 %v449_v21, %v374_v24 }
  0xe5   : > { %v583_v22 = vpop.f32.mrf.mxu1 }
 0x160   : > { %v363_v25 = vpop.f32.mrf.mxu0 }
 0x161   : > { %v364_v26 = vadd.f32 %v363_v25, %v291_v23 }
 0x162   : > { %v578_v28 = vpop.f32.mrf.mxu0 }
 0x163   : > { %v367_v29 = vmax.f32 %v364_v26, 0.0 }
 0x165   : > { %v453_v30 = vadd.f32 %v450_v27, %v367_v29 }
 0x167   : > { %v454_v31 = vmax.f32 %v453_v30, 0.0 }
 0x169   : > { %456 = vst.msk [vmem:[%s237_s12] sm:$0xff] %vm455_vm6, %v454_v31 }
 0x16a   : > { %661 = shalt.err (!%p658_p5)
}
 0x16b   : > { %s662_s29 = scalar_lea.hbm %s477_s16, 128  ;;  %s666_s9 = scalar_lea.hbm %s887_s5, 256 }
 0x16c   : > { %p663_p6 = scmp.ne.s32.totalorder %s477_s16, %s662_s29  ;;  %p667_p10 = scmp.lt.s32.totalorder %s477_s16, %s887_s5 }
 0x16d   : > { %p668_p11 = scmp.lt.s32.totalorder %s666_s9, %s662_s29 }
 0x16e   : > { %p664_p7 = pnand %p663_p6, %p804_p4 }
 0x16f   : > { %p669_p12 = por %p668_p11, %p667_p10 }
 0x170   : > { %p665_p9 = pneg %p664_p7 }
 0x172   : > { %p670_p13 = pnand %p669_p12, %p665_p9 }
 0x174   : > { %673 = shalt.err (!%p670_p13)
}
 0x175   : > { %584 = dma.vmem_to_hbm [thread:$0]  (%p804_p4), %s480_s13, 128, %s477_s16, %s465_s17  }
 0x176 PF: > { %p590_p0 = scmp.ge.s32.totalorder %s724_s23, 2  ;;  %s491_s12 = sand.u32 1, %s704_s18  }
 0x177   : > { %s492_s14 = scalar_lea.sflag [#allocation5], %s491_s12 }
 0x178   : > { %p587_p1 = pnand %p590_p0, %p811_p8 }
 0x17a   : > { %p588_p2 = pneg %p587_p1 }
 0x17c   : > { %699 = dma.done.wait (%p588_p2), %s492_s14, 128  }
 0x17d   : > { %701 = vsyncadd (%p588_p2), %s492_s14, 4294967168  ;;  %s18_s23 = sadd.s32 1, %s724_s23   ;;  %s890_s18 = smov %s708_s19 }
 0x17e   : > { %p15_p3 = scmp.ge.s32.totalorder %s18_s23, 4   ;;  %s891_s19 = smov %s712_s20 }
 0x17f   : > { %s892_s20 = smov %s817_s6  ;;  %s893_s21 = smov %s720_s22 }
 0x180   : > { %s894_s22 = smov %s896_s26  ;;  %17 = sbr.rel (!%p15_p3) target bundleno = 4 (0x4), region = 83 }
 0x185   :  { %497 = vsyncpa [#allocation5], 1 }
 0x186   :  { %499 = vsyncpa [#allocation5 + $0x1], 1 }

</bundles_post_ra>
